<compile_context>
chip_gen: v7x
topology: tpu7x:2x2x1
jax: 0.10.0
libtpu: 0.0.40
codegen_flags: <defaults>
</compile_context>

<pallas_src>
import functools

import jax
import jax.numpy as jnp
from jax.experimental import pallas as pl
from jax.experimental.pallas import tpu as pltpu


def _mma_kernel(a_ref, t_ref, wa_ref, wt_ref, b_ref, wc_ref, out_ref, *, s_valid):
    # a_ref:  (Bt, S, Da)   audio features
    # t_ref:  (Bt, S, Dt)   text features
    # wa_ref: (Da, A)       audio projection weight
    # wt_ref: (Dt, A)       text projection weight
    # b_ref:  (1, A)        fused projection bias (ba + bt)
    # wc_ref: (1, A)        combined_attention weight as a row vector
    # out_ref:(Bt, S)       softmax attention weights (lane-dense)
    Bt, S, Da = a_ref.shape
    A = wa_ref.shape[1]

    # Two accumulating MXU dots over all Bt*S rows (fills the MXU M dim,
    # avoids any HBM-side concatenation of the two modalities).
    a2d = a_ref[...].reshape(Bt * S, Da)
    t2d = t_ref[...].reshape(Bt * S, t_ref.shape[-1])
    proj = jnp.dot(a2d, wa_ref[...], preferred_element_type=jnp.float32)
    proj = proj + jnp.dot(t2d, wt_ref[...], preferred_element_type=jnp.float32)

    # tanh(audio_attn + text_attn), back in (Bt, S, A) layout (f32 math).
    combined = jnp.tanh(proj.reshape(Bt, S, A) + b_ref[...])

    # combined_attention: (A -> 1) projection as a VPU multiply + lane reduce.
    # (bc is omitted: a scalar shift cancels under softmax.)
    logits = jnp.sum(combined * wc_ref[...], axis=-1)        # (Bt, S)

    # Mask padded sequence positions (only present when S was padded to 8k).
    if s_valid < S:
        lane = jax.lax.broadcasted_iota(jnp.int32, (Bt, S), 1)
        logits = jnp.where(lane < s_valid, logits, -jnp.inf)

    # Softmax over the sequence axis (last axis here == dim=1 of [B, S, 1]).
    m = jnp.max(logits, axis=-1, keepdims=True)
    e = jnp.exp(logits - m)
    denom = jnp.sum(e, axis=-1, keepdims=True)
    out_ref[...] = (e * pl.reciprocal(denom, approx=True)).astype(out_ref.dtype)


def _round_up(x, m):
    return -(-x // m) * m


def _tile_vmem_bytes(bt, s, k, a, itemsize):
    """Rough per-step VMEM footprint of one grid step."""
    return (2 * bt * s * k * itemsize   # double-buffered audio+text input blocks
            + 3 * bt * s * a * 4        # f32 intermediates (proj / combined / prod)
            + 2 * k * a * itemsize)     # double-buffered weights


def _choose_batch_tile(B, S, K, A, itemsize, budget=16 * 1024 * 1024):
    """Return (B_pad, Bt) with Bt % 8 == 0 (or Bt == B_pad), Bt | B_pad.

    Picks the largest tile fitting `budget`, preferring >= 2 grid steps so the
    "parallel" axis can shard across v7x's two TensorCores and DMA overlaps
    compute.
    """
    B_pad = B if (B % 8 == 0 or B < 8) else _round_up(B, 8)

    cands = sorted(
        {d for d in range(8, B_pad + 1, 8) if B_pad % d == 0} | {B_pad},
        reverse=True)
    multi = [d for d in cands if d < B_pad]        # tiles giving >= 2 grid steps
    for pool in (multi, cands):
        for bt in pool:
            if _tile_vmem_bytes(bt, S, K, A, itemsize) <= budget:
                return B_pad, bt
    return B_pad, min(cands)


def multimodal_attention(audio_embed, text_embed, params):
    """audio_embed: [B, S, Da], text_embed: [B, S, Dt] -> weights [B, S, 1].

    Activations are streamed in the caller-provided dtype (pass bf16 from the
    upstream producer for ~2x less DMA on this memory-bound op); matmuls
    accumulate in f32 and all elementwise / softmax math is f32.
    """
    wa, ba, wt, bt_, wc, bc = params
    del bc  # scalar shift on the logits; cancels exactly under softmax
    B, S, Da = audio_embed.shape
    Dt = text_embed.shape[-1]
    A = wa.shape[1]
    K = Da + Dt

    act_dtype = jnp.result_type(audio_embed.dtype, text_embed.dtype)
    itemsize = jnp.dtype(act_dtype).itemsize

    # Tiny parameter tensors: cast to match the streamed activations / f32.
    wa_c = wa.astype(act_dtype)                              # (Da, A)
    wt_c = wt.astype(act_dtype)                              # (Dt, A)
    b_cat = (ba + bt_).reshape(1, A).astype(jnp.float32)     # (1, A)
    wc_row = wc.reshape(1, A).astype(jnp.float32)            # (1, A)

    # Pad S to a multiple of 8 (layout-free reshapes); pad B only if needed to
    # obtain a legal multiple-of-8 batch tile. Padded rows are masked/discarded.
    S_pad = S if S % 8 == 0 else _round_up(S, 8)
    B_pad, Bt = _choose_batch_tile(B, S_pad, K, A, itemsize)

    a = audio_embed
    t = text_embed
    if B_pad != B or S_pad != S:
        a = jnp.pad(a, ((0, B_pad - B), (0, S_pad - S), (0, 0)))
        t = jnp.pad(t, ((0, B_pad - B), (0, S_pad - S), (0, 0)))

    grid = (B_pad // Bt,)

    # Raise the scoped-VMEM limit only when the tile actually needs it
    # (v5e default is 16 MiB; stay under v7x's 64 MiB physical).
    cparams = dict(dimension_semantics=("parallel",))
    if _tile_vmem_bytes(Bt, S_pad, K, A, itemsize) > (12 << 20):
        cparams["vmem_limit_bytes"] = 48 * 1024 * 1024
    compiler_params = pltpu.CompilerParams(**cparams)

    cost = pl.CostEstimate(
        flops=2 * B_pad * S_pad * K * A + 2 * B_pad * S_pad * A,
        transcendentals=B_pad * S_pad * (A + 1),
        bytes_accessed=(B_pad * S_pad * K * itemsize
                        + K * A * itemsize + 2 * A * 4
                        + B_pad * S_pad * 4),
    )

    kernel = functools.partial(_mma_kernel, s_valid=S)

    out = pl.pallas_call(
        kernel,
        out_shape=jax.ShapeDtypeStruct((B_pad, S_pad), jnp.float32),
        grid_spec=pltpu.PrefetchScalarGridSpec(
            num_scalar_prefetch=0,
            grid=grid,
            in_specs=[
                pl.BlockSpec((Bt, S_pad, Da), lambda b: (b, 0, 0)),  # audio
                pl.BlockSpec((Bt, S_pad, Dt), lambda b: (b, 0, 0)),  # text
                pl.BlockSpec((Da, A),         lambda b: (0, 0)),     # Wa
                pl.BlockSpec((Dt, A),         lambda b: (0, 0)),     # Wt
                pl.BlockSpec((1, A),          lambda b: (0, 0)),     # ba + bt
                pl.BlockSpec((1, A),          lambda b: (0, 0)),     # wc row
            ],
            out_specs=pl.BlockSpec((Bt, S_pad), lambda b: (b, 0)),
        ),
        compiler_params=compiler_params,
        cost_estimate=cost,
    )(a, t, wa_c, wt_c, b_cat, wc_row)

    return out[:B, :S].reshape(B, S, 1)


def init_params(key, audio_dim, text_dim, attn_dim):
    """Deterministic init mimicking nn.Linear's U(-1/sqrt(fan_in), 1/sqrt(fan_in))."""
    ks = jax.random.split(key, 6)

    def lin(kw, kb, fan_in, fan_out):
        bound = 1.0 / jnp.sqrt(fan_in)
        w = jax.random.uniform(kw, (fan_in, fan_out), jnp.float32, -bound, bound)
        b = jax.random.uniform(kb, (1, fan_out), jnp.float32, -bound, bound)
        return w, b

    wa, ba = lin(ks[0], ks[1], audio_dim, attn_dim)
    wt, bt = lin(ks[2], ks[3], text_dim, attn_dim)
    wc, bc = lin(ks[4], ks[5], attn_dim, 1)
    return wa, ba, wt, bt, wc, bc


def _reference(audio, text, params):
    wa, ba, wt, bt, wc, bc = params
    aa = audio @ wa + ba[0]
    tt = text @ wt + bt[0]
    c = jnp.tanh(aa + tt)
    logits = c @ wc + bc[0]                       # [B, S, 1]
    return jax.nn.softmax(logits, axis=1)


if __name__ == "__main__":
    B, S = 2, 8
    AUDIO_DIM, TEXT_DIM, ATTN_DIM = 32, 24, 16

    key = jax.random.PRNGKey(0)
    k_a, k_t, k_p = jax.random.split(key, 3)

    audio_embed = jax.random.normal(k_a, (B, S, AUDIO_DIM), jnp.float32)
    text_embed = jax.random.normal(k_t, (B, S, TEXT_DIM), jnp.float32)
    params = init_params(k_p, AUDIO_DIM, TEXT_DIM, ATTN_DIM)

    out = multimodal_attention(audio_embed, text_embed, params)
    out = jax.block_until_ready(out)

    ref = _reference(audio_embed, text_embed, params)
    assert out.shape == (B, S, 1)
    # Tolerance loosened slightly vs. 1e-5 because of the EUP approx reciprocal.
    assert jnp.allclose(out, ref, atol=1e-3, rtol=1e-3), \
        float(jnp.max(jnp.abs(out - ref)))

    print("KERNEL_OK")
</pallas_src>

<mosaic_0001>
module attributes {stable_mosaic.version = 11 : i64} {
  func.func @_mma_kernel(%arg0: i32, %arg1: memref<2x8x32xf32, #tpu.memory_space<vmem>>, %arg2: memref<2x8x24xf32, #tpu.memory_space<vmem>>, %arg3: memref<32x16xf32, #tpu.memory_space<vmem>>, %arg4: memref<24x16xf32, #tpu.memory_space<vmem>>, %arg5: memref<1x16xf32, #tpu.memory_space<vmem>>, %arg6: memref<1x16xf32, #tpu.memory_space<vmem>>, %arg7: memref<2x8xf32, #tpu.memory_space<vmem>>) attributes {dimension_semantics = [#tpu.dimension_semantics<parallel>], iteration_bounds = array<i64: 1>, scalar_prefetch = 0 : i64, scratch_operands = 0 : i64, tpu.core_type = #tpu.core_type<tc>, window_params = [{transform_indices = @transform_0, window_bounds = array<i64: 2, 8, 32>}, {transform_indices = @transform_1, window_bounds = array<i64: 2, 8, 24>}, {pipeline_mode = #tpu.pipeline_mode<synchronous>, transform_indices = @transform_2, window_bounds = array<i64: 32, 16>}, {pipeline_mode = #tpu.pipeline_mode<synchronous>, transform_indices = @transform_3, window_bounds = array<i64: 24, 16>}, {pipeline_mode = #tpu.pipeline_mode<synchronous>, transform_indices = @transform_4, window_bounds = array<i64: 1, 16>}, {pipeline_mode = #tpu.pipeline_mode<synchronous>, transform_indices = @transform_5, window_bounds = array<i64: 1, 16>}, {transform_indices = @transform_6, window_bounds = array<i64: 2, 8>}]} {
    %c0 = arith.constant 0 : index
    %c0_0 = arith.constant 0 : index
    %c0_1 = arith.constant 0 : index
    %0 = vector.load %arg1[%c0, %c0_0, %c0_1] : memref<2x8x32xf32, #tpu.memory_space<vmem>>, vector<2x8x32xf32>
    %1 = vector.shape_cast %0 : vector<2x8x32xf32> to vector<16x32xf32>
    %c0_2 = arith.constant 0 : index
    %c0_3 = arith.constant 0 : index
    %c0_4 = arith.constant 0 : index
    %2 = vector.load %arg2[%c0_2, %c0_3, %c0_4] : memref<2x8x24xf32, #tpu.memory_space<vmem>>, vector<2x8x24xf32>
    %3 = vector.shape_cast %2 : vector<2x8x24xf32> to vector<16x24xf32>
    %c0_5 = arith.constant 0 : index
    %c0_6 = arith.constant 0 : index
    %4 = vector.load %arg3[%c0_5, %c0_6] : memref<32x16xf32, #tpu.memory_space<vmem>>, vector<32x16xf32>
    %cst = arith.constant dense<0.000000e+00> : vector<16x16xf32>
    %5 = tpu.matmul %1, %4, %cst {dimension_numbers = #tpu.dot_dimension_numbers<[1], [0], [0], [1], [0, 0, 1, 1], [], []>} : vector<16x32xf32>, vector<32x16xf32>, vector<16x16xf32> -> vector<16x16xf32>
    %c0_7 = arith.constant 0 : index
    %c0_8 = arith.constant 0 : index
    %6 = vector.load %arg4[%c0_7, %c0_8] : memref<24x16xf32, #tpu.memory_space<vmem>>, vector<24x16xf32>
    %cst_9 = arith.constant dense<0.000000e+00> : vector<16x16xf32>
    %7 = tpu.matmul %3, %6, %cst_9 {dimension_numbers = #tpu.dot_dimension_numbers<[1], [0], [0], [1], [0, 0, 1, 1], [], []>} : vector<16x24xf32>, vector<24x16xf32>, vector<16x16xf32> -> vector<16x16xf32>
    %8 = arith.addf %5, %7 : vector<16x16xf32>
    %9 = vector.shape_cast %8 : vector<16x16xf32> to vector<2x8x16xf32>
    %c0_10 = arith.constant 0 : index
    %c0_11 = arith.constant 0 : index
    %10 = vector.load %arg5[%c0_10, %c0_11] : memref<1x16xf32, #tpu.memory_space<vmem>>, vector<1x16xf32>
    %11 = vector.shape_cast %10 : vector<1x16xf32> to vector<1x1x16xf32>
    %12 = vector.broadcast %11 : vector<1x1x16xf32> to vector<2x8x16xf32>
    %13 = arith.addf %9, %12 : vector<2x8x16xf32>
    %14 = math.tanh %13 : vector<2x8x16xf32>
    %c0_12 = arith.constant 0 : index
    %c0_13 = arith.constant 0 : index
    %15 = vector.load %arg6[%c0_12, %c0_13] : memref<1x16xf32, #tpu.memory_space<vmem>>, vector<1x16xf32>
    %16 = vector.shape_cast %15 : vector<1x16xf32> to vector<1x1x16xf32>
    %17 = vector.broadcast %16 : vector<1x1x16xf32> to vector<2x8x16xf32>
    %18 = arith.mulf %14, %17 : vector<2x8x16xf32>
    %cst_14 = arith.constant dense<0.000000e+00> : vector<2x8xf32>
    %19 = vector.multi_reduction <add>, %18, %cst_14 [2] : vector<2x8x16xf32> to vector<2x8xf32>
    %cst_15 = arith.constant dense<0xFF800000> : vector<2xf32>
    %20 = vector.multi_reduction <maximumf>, %19, %cst_15 [1] : vector<2x8xf32> to vector<2xf32>
    %21 = vector.shape_cast %20 : vector<2xf32> to vector<2x1xf32>
    %22 = vector.broadcast %21 : vector<2x1xf32> to vector<2x8xf32>
    %23 = arith.subf %19, %22 : vector<2x8xf32>
    %24 = math.exp %23 : vector<2x8xf32>
    %cst_16 = arith.constant dense<0.000000e+00> : vector<2xf32>
    %25 = vector.multi_reduction <add>, %24, %cst_16 [1] : vector<2x8xf32> to vector<2xf32>
    %26 = vector.shape_cast %25 : vector<2xf32> to vector<2x1xf32>
    %27 = tpu.reciprocal %26 {approx = true} : vector<2x1xf32> -> vector<2x1xf32>
    %28 = vector.broadcast %27 : vector<2x1xf32> to vector<2x8xf32>
    %29 = arith.mulf %24, %28 : vector<2x8xf32>
    %c0_17 = arith.constant 0 : index
    %c0_18 = arith.constant 0 : index
    %30 = vector.load %arg7[%c0_17, %c0_18] : memref<2x8xf32, #tpu.memory_space<vmem>>, vector<2x8xf32>
    tpu.vector_store %arg7[%c0_17, %c0_18], %29 {strides = array<i32>} : memref<2x8xf32, #tpu.memory_space<vmem>>, vector<2x8xf32>,
    return
  }
  func.func @transform_0(%arg0: i32) -> (i32, i32, i32) {
    %c0_i32 = arith.constant 0 : i32
    %c0_i32_0 = arith.constant 0 : i32
    %c0_i32_1 = arith.constant 0 : i32
    return %arg0, %c0_i32, %c0_i32_0 : i32, i32, i32
  }
  func.func @transform_1(%arg0: i32) -> (i32, i32, i32) {
    %c0_i32 = arith.constant 0 : i32
    %c0_i32_0 = arith.constant 0 : i32
    %c0_i32_1 = arith.constant 0 : i32
    return %arg0, %c0_i32, %c0_i32_0 : i32, i32, i32
  }
  func.func @transform_2(%arg0: i32) -> (i32, i32) {
    %c0_i32 = arith.constant 0 : i32
    %c0_i32_0 = arith.constant 0 : i32
    %c0_i32_1 = arith.constant 0 : i32
    return %c0_i32, %c0_i32_0 : i32, i32
  }
  func.func @transform_3(%arg0: i32) -> (i32, i32) {
    %c0_i32 = arith.constant 0 : i32
    %c0_i32_0 = arith.constant 0 : i32
    %c0_i32_1 = arith.constant 0 : i32
    return %c0_i32, %c0_i32_0 : i32, i32
  }
  func.func @transform_4(%arg0: i32) -> (i32, i32) {
    %c0_i32 = arith.constant 0 : i32
    %c0_i32_0 = arith.constant 0 : i32
    %c0_i32_1 = arith.constant 0 : i32
    return %c0_i32, %c0_i32_0 : i32, i32
  }
  func.func @transform_5(%arg0: i32) -> (i32, i32) {
    %c0_i32 = arith.constant 0 : i32
    %c0_i32_0 = arith.constant 0 : i32
    %c0_i32_1 = arith.constant 0 : i32
    return %c0_i32, %c0_i32_0 : i32, i32
  }
  func.func @transform_6(%arg0: i32) -> (i32, i32) {
    %c0_i32 = arith.constant 0 : i32
    %c0_i32_0 = arith.constant 0 : i32
    return %arg0, %c0_i32 : i32, i32
  }
}

</mosaic_0001>

<bundles_post_ra>
// kernel: tpu_custom_call.1
= control target key start
LH: loop header
LB: loop body
LE: loop exit
PB: predicated region body
PF: predicated region fallthrough
CT: control target
= control target key end

     0   :  { %vm35_vm0 = vcmask 195584   ;;  %vm117_vm1 = vcmask 261120   ;;  %s515_s0 = inlined_call_operand.vmem [shape: f32[2,8,32], index: 0, kind: input, shape index: {}]   ;;  %s516_s1 = inlined_call_operand.vmem [shape: f32[2,8,24], index: 1, kind: input, shape index: {}]   ;;  %s517_s2 = inlined_call_operand.vmem [shape: f32[32,16], index: 2, kind: input, shape index: {}]   ;;  %s518_s3 = inlined_call_operand.vmem [shape: f32[24,16], index: 3, kind: input, shape index: {}]   ;;  %s519_s4 = inlined_call_operand.vmem [shape: f32[1,16], index: 4, kind: input, shape index: {}]   ;;  %s520_s5 = inlined_call_operand.vmem [shape: f32[1,16], index: 5, kind: input, shape index: {}]   ;;  %s521_s6 = inlined_call_operand.hbm [shape: f32[2,8], index: 6, kind: output, shape index: {}]  }
   0x1   :  { %v28_v0 = vld [vmem:[%s517_s2] sm:$0xff]  ;;  %v29_v1 = vld [vmem:[%s517_s2 + $0x8] sm:$0xff]  ;;  %v30_v5 = vld [vmem:[%s517_s2 + $0x10] sm:$0xff] }
   0x2   :  { %v32_v2 = vld [vmem:[%s518_s3] sm:$0xff]  ;;  %v371_v3 = vpack.c.bf16 %v29_v1, %v28_v0  ;;  %v33_v4 = vld [vmem:[%s518_s3 + $0x8] sm:$0xff]  ;;  %v31_v6 = vld [vmem:[%s517_s2 + $0x18] sm:$0xff] }
   0x3   :  { %v367_v7 = vpack.c.bf16 %v33_v4, %v32_v2  ;;  %v375_v8 = vpack.c.bf16 %v31_v6, %v30_v5  ;;  %v26_v9 = vld [vmem:[%s516_s1] sm:$0xff]  ;;  %v34_v10 = vld [vmem:[%s518_s3 + $0x10] sm:$0xff] }
   0x4   :  { %372 = vmatprep.subr.bf16.mxu0 %v371_v3  ;;  %353 = vmatprep.mubr.msk.f32.mxu1 %vm35_vm0, %v26_v9  ;;  %v24_v11 = vld [vmem:[%s515_s0] sm:$0xff] }
   0x5   :  { %11 = vsyncpa [#allocation3], 0  ;;  %368 = vmatprep.subr.bf16.mxu1 %v367_v7  ;;  %374 = vmatpush3.bf16.msra.mxu0 %v371_v3  ;;  %v27_v12 = vld [vmem:[%s516_s1 + $0x8] sm:$0xff]  ;;  %v334_v17 = vld [vmem:[%s519_s4] ss:$0 sm:$0xff]  ;;  %vm219_vm2 = vcmask 130048   ;;  %v228_v30 = vlaneseq }
   0x6   :  { %370 = vmatpush3.bf16.msra.mxu1 %v367_v7  ;;  %376 = vmatprep.subr.bf16.mxu0 %v375_v8  ;;  %v25_v13 = vld [vmem:[%s515_s0 + $0x8] sm:$0xff]  ;;  %v335_v23 = vld [vmem:[%s520_s5] ss:$0 sm:$0xff]  ;;  %vm238_vm3 = vcmask 1041409   ;;  %vm241_vm4 = vcmask 58368   ;;  %v419_v40 = vmov 0  }
   0x7   :  { %351 = vmatprep.subr.mxu1 %v34_v10  ;;  %364 = vmatprep.mubr.msk.f32.mxu0 %vm117_vm1, %v24_v11  ;;  %v229_v31 = vand.u32 127, %v228_v30  ;;  %v231_v32 = vshrl.u32 %v228_v30, 7  ;;  %s420_s4 = smov [#allocation2]  }
   0x8   :  { %384 = vset.pattern.permute.xlu0 %v419_v40  ;;  %383 = vset.pattern.permute.xlu1 %v419_v40  ;;  %s322_s5 = sshll.u32 %s420_s4, 4  ;;  %s323_s5 = int_to_ptr.vmem [resolvable:$true] %s322_s5 }
   0x9   :  { %378 = vmatpush3.bf16.msra.mxu0 %v375_v8  ;;  %v232_v34 = vsub.s32 %v229_v31, %v231_v32  ;;  %v248_v41 = vsub.s32 0, %v231_v32  ;;  %v252_v42 = vsub.s32 1, %v231_v32  ;;  %s395_s19 = scalar_lea.vmem %s323_s5, 32  ;;  %p400_p1 = scmp.lt.s32.totalorder %s323_s5, %s323_s5 }
   0xa   :  { %352 = vmatpush3.msra.mxu1 %v34_v10  ;;  %p396_p0 = scmp.ne.s32.totalorder %s323_s5, %s395_s19  ;;  %p401_p2 = scmp.lt.s32.totalorder %s395_s19, %s395_s19 }
   0xb   :  { %354 = vmatmul.mubr.msk.f32.vlgmr.msra.gmra.mrb[0].mxu1 %vm35_vm0, %v27_v12 }
   0xc   :  { %365 = vmatmul.mubr.msk.f32.vlgmr.msra.gmra.mrb[0].mxu0 %vm117_vm1, %v25_v13  ;;  %p402_p3 = por %p401_p2, %p400_p1 }
   0xe   :  { %p403_p4 = pnand %p402_p3, %p396_p0 }
  0xde   :  { %v355_v14 = vpop.f32.mrb[0].mxu1 }
  0xdf   :  { %v108_v15 = vpop.f32.mrb[1].mxu1  ;;  %v366_v16 = vpop.f32.mrb[0].mxu0 }
  0xe0   :  { %v196_v18 = vadd.f32 %v366_v16, %v355_v14  ;;  %v190_v19 = vpop.f32.mrb[1].mxu0 }
  0xe1   :  { %v191_v20 = vadd.f32 %v190_v19, %v108_v15 }
  0xe2   :  { %v207_v21 = vadd.f32 %v334_v17, %v196_v18 }
  0xe3   :  { %v206_v22 = vadd.f32 %v334_v17, %v191_v20 }
  0xe4   :  { %385 = vtanh.f32 %v207_v21 }
  0xe5   :  { %387 = vtanh.f32 %v206_v22 }
  0xee   :  { %v386_v24 = vpop.eup %385 }
  0xef   :  { %v388_v25 = vpop.eup %387  ;;  %v218_v28 = vmul.f32 %v386_v24, %v335_v23 }
  0xf0   :  { %v217_v26 = vmul.f32 %v388_v25, %v335_v23 }
  0xf1   :  { %v223_v29 = vsel %vm219_vm2, %v218_v28, 0.0 }
  0xf2   :  { %v220_v27 = vsel %vm219_vm2, %v217_v26, 0.0 }
  0xf3   :  { %221 = vadd.xlane.f32.xlu0 %v220_v27 }
  0xf7   :  { %224 = vadd.xlane.f32.xlu0 %v223_v29 }
 0x180   :  { %v222_v33 = vpop.xlane.xlu0 %221 }
 0x181   :  { %v233_v36 = vrot.slane %v222_v33, %v232_v34 }
 0x184   :  { %v225_v35 = vpop.xlane.xlu0 %224 }
 0x185   :  { %v237_v37 = vrot.slane %v225_v35, %v232_v34 }
 0x187   :  { %v239_v38 = vsel %vm238_vm3, %v237_v37, %v233_v36 }
 0x188   :  { %v242_v39 = vsel %vm241_vm4, %v239_v38, -inf }
 0x189   :  { %243 = vmax.xlane.f32.xlu1 %v242_v39 }
 0x216   :  { %v244_v43 = vpop.xlane.xlu1 %243 }
 0x217   :  { %v249_v44 = vrot.slane %v244_v43, %v248_v41  ;;  %v253_v45 = vrot.slane %v244_v43, %v252_v42 }
 0x219   :  { %v256_v46 = vsub.f32 %v222_v33, %v249_v44  ;;  %v257_v47 = vsub.f32 %v225_v35, %v253_v45 }
 0x21b   :  { %v258_v48 = vmul.f32 1.442695, %v256_v46  ;;  %v260_v49 = vmul.f32 1.442695, %v257_v47 }
 0x21d   :  { %389 = vpow2.f32 %v258_v48 }
 0x21e   :  { %391 = vpow2.f32 %v260_v49 }
 0x227   :  { %v390_v50 = vpop.eup %389 }
 0x228   :  { %v392_v51 = vpop.eup %391  ;;  %265 = vperm.xlu1 %383, %v390_v50  }
 0x229   :  { %268 = vperm.xlu0 %384, %v392_v51  }
 0x2a7   :  { %v266_v52 = vpop.permute.xlu1 %265 }
 0x2a8   :  { %v269_v53 = vpop.permute.xlu0 %268  ;;  %v273_v54 = vrot.slane %v266_v52, %v232_v34 }
 0x2a9   :  { %v277_v55 = vrot.slane %v269_v53, %v232_v34 }
 0x2ab   :  { %v278_v56 = vsel %vm238_vm3, %v277_v55, %v273_v54 }
 0x2ac   :  { %v280_v57 = vsel %vm241_vm4, %v278_v56, 0.0 }
 0x2ad   :  { %281 = vadd.xlane.f32.xlu1 %v280_v57 }
 0x33a   :  { %v282_v58 = vpop.xlane.xlu1 %281 }
 0x33b   :  { %393 = vrcp.f32 %v282_v58 }
 0x345   :  { %v394_v59 = vpop.eup %393 }
 0x346   :  { %v288_v60 = vrot.slane %v394_v59, %v248_v41  ;;  %v292_v62 = vrot.slane %v394_v59, %v252_v42 }
 0x348   :  { %v295_v61 = vmul.f32 %v390_v50, %v288_v60  ;;  %v296_v63 = vmul.f32 %v392_v51, %v292_v62 }
 0x34a   :  { %300 = vperm.xlu0 %384, %v295_v61  }
 0x34e   :  { %303 = vperm.xlu0 %384, %v296_v63  }
 0x3c9   :  { %v301_v0 = vpop.permute.xlu0 %300 }
 0x3ca   :  { %v308_v2 = vrot.slane %v301_v0, %v232_v34 }
 0x3cd   :  { %v304_v1 = vpop.permute.xlu0 %303 }
 0x3ce   :  { %v312_v3 = vrot.slane %v304_v1, %v232_v34 }
 0x3d0   :  { %v313_v4 = vsel %vm238_vm3, %v312_v3, %v308_v2 }
 0x3d1   :  { %315 = vst.msk [vmem:[#allocation2] sm:$0x3] %vm241_vm4, %v313_v4 }
 0x3d2   :  { %406 = shalt.err (!%p403_p4)
}
 0x3d3   :  { %s407_s22 = scalar_lea.hbm %s521_s6, 32 }
 0x3d4   :  { %p408_p5 = scmp.ne.s32.totalorder %s521_s6, %s407_s22  ;;  %p411_p6 = scmp.lt.u32.totalorder %s407_s22, %s521_s6 }
 0x3d6   :  { %p413_p7 = pnand %p411_p6, %p408_p5 }
 0x3d8   :  { %416 = shalt.err (!%p413_p7)
}
 0x3d9   :  { %325 = dma.vmem_to_hbm [thread:$0]  %s323_s5, 32, %s521_s6, [#allocation3]  }
 0x3da   :  { %417 = dma.done.wait [#allocation3], 32  }
 0x3db   :  { %418 = vsyncadd [#allocation3], 4294967264 }
 0x3dc   :  { %329 = vsyncpa [#allocation3], 1 }

</bundles_post_ra>
